<compile_context>
chip_gen: v7x
topology: tpu7x:2x2x1
jax: 0.10.0
libtpu: 0.0.40
codegen_flags: <defaults>
</compile_context>

<pallas_src>
import math

import jax
import jax.numpy as jnp
from jax import lax
from jax.experimental import pallas as pl
from jax.experimental.pallas import tpu as pltpu


def _interp_matrix(out_size: int, in_size: int) -> jnp.ndarray:
    """1-D bilinear interpolation matrix, PyTorch align_corners=False rules."""
    scale = in_size / out_size
    dst = jnp.arange(out_size, dtype=jnp.float32)
    src = (dst + 0.5) * scale - 0.5
    src = jnp.maximum(src, 0.0)                       # PyTorch clamps negative coords
    lo = jnp.floor(src).astype(jnp.int32)
    lo = jnp.minimum(lo, in_size - 1)
    hi = jnp.minimum(lo + 1, in_size - 1)
    lam = src - lo.astype(jnp.float32)
    cols = jnp.arange(in_size, dtype=jnp.int32)[None, :]
    onehot_lo = (cols == lo[:, None]).astype(jnp.float32)
    onehot_hi = (cols == hi[:, None]).astype(jnp.float32)
    return onehot_lo * (1.0 - lam)[:, None] + onehot_hi * lam[:, None]


_MIB = 1024 * 1024


def _vmem_limit_bytes() -> int:
    """Physical per-core VMEM minus explicit headroom for Mosaic internals.

    Fallback keys off device_kind (128 MiB v5e/v6e, 64 MiB v7x) instead of a
    blanket conservative 64 MiB, so 128 MiB parts keep their full T_BLK budget.
    """
    cap = None
    try:
        cap = int(pltpu.get_tpu_info().vmem_capacity_bytes)
    except Exception:
        cap = None
    if not cap or cap <= 0:
        kind = ""
        try:
            kind = jax.devices()[0].device_kind.lower()
        except Exception:
            pass
        cap = 64 * _MIB if "v7" in kind else 128 * _MIB
    return max(cap - 16 * _MIB, 32 * _MIB)


def _pick_t_blk(n_frames, h, w, new_h, new_w_out, w_first, vmem_limit):
    """Frames per grid step.

    Input/output blocks are double-buffered by the pipeline; the fused
    per-frame intermediate is small and does not scale with T_BLK anymore.
    Block second-minor dims must be 8-aligned unless they span the full dim.
    """
    bpe = 4
    weights = 2 * (new_h * h + w * new_w_out) * bpe            # double-buffered constants
    inter = 2 * (h * new_w_out if w_first else new_h * w) * bpe  # ~2 live fused temps
    per_frame = 2 * (h * w + new_h * new_w_out) * bpe           # double-buffered in/out
    budget = vmem_limit - weights - inter - 4 * _MIB            # explicit margin
    target = max(1, budget // per_frame)
    target = int(min(target, n_frames, 16))                     # cap unroll depth
    legal = [d for d in range(1, n_frames + 1)
             if n_frames % d == 0
             and (d == n_frames or ((d * h) % 8 == 0 and (d * new_h) % 8 == 0))]
    fits = [d for d in legal if d <= target]
    return max(fits) if fits else min(legal)


def _make_kernel(t_blk: int, h: int, new_h: int, w_first: bool, precision):
    """Kernel factory; one T_BLK-frame block per invocation, fused per frame."""

    def kernel(ah_ref, awt_ref, x_ref, o_ref):
        cd = ah_ref.dtype
        ah = ah_ref[...]          # (new_h, H)
        awt = awt_ref[...]        # (W, NWo) pre-transposed, no in-kernel .T

        def resize_frame(xf):
            xf = xf.astype(cd)    # no-op for f32 compute; bf16 fast path otherwise
            if w_first:
                tmp = jnp.dot(xf, awt, preferred_element_type=jnp.float32,
                              precision=precision)              # (H, NWo)
                out = jnp.dot(ah, tmp.astype(cd),
                              preferred_element_type=jnp.float32,
                              precision=precision)              # (new_h, NWo)
            else:
                tmp = jnp.dot(ah, xf, preferred_element_type=jnp.float32,
                              precision=precision)              # (new_h, W)
                out = jnp.dot(tmp.astype(cd), awt,
                              preferred_element_type=jnp.float32,
                              precision=precision)              # (new_h, NWo)
            return out.astype(o_ref.dtype)

        if t_blk == 1:
            o_ref[...] = resize_frame(x_ref[...])
            return

        def body(i, carry):
            off_in = pl.multiple_of(i * h, h)
            off_out = pl.multiple_of(i * new_h, new_h)
            xf = x_ref[pl.ds(off_in, h), :]
            o_ref[pl.ds(off_out, new_h), :] = resize_frame(xf)
            return carry

        # fori_loop bounds live ranges per frame (a Python `for` would not);
        # unroll=True keeps LLO scheduler visibility across the short loop.
        lax.fori_loop(0, t_blk, body, None, unroll=True)

    return kernel


def _build_call(n_frames, h, w, new_h, new_w_out, t_blk, w_first, x_dtype,
                vmem_limit, precision):
    kernel = _make_kernel(t_blk, h, new_h, w_first, precision)

    if w_first:
        macs = h * new_w_out * (w + new_h)
    else:
        macs = new_h * w * (h + new_w_out)
    cost = pl.CostEstimate(
        flops=2 * n_frames * macs,
        transcendentals=0,
        bytes_accessed=4 * (n_frames * (h * w + new_h * new_w_out)
                            + new_h * h + w * new_w_out))

    return pl.pallas_call(
        kernel,
        out_shape=jax.ShapeDtypeStruct((n_frames * new_h, new_w_out), x_dtype),
        grid_spec=pltpu.PrefetchScalarGridSpec(
            num_scalar_prefetch=0,
            # Single flat parallel axis over all C*T frames -> clean 2-TC
            # load balance on v7x and coarser T_BLK choices everywhere.
            grid=(n_frames // t_blk,),
            in_specs=[
                pl.BlockSpec((new_h, h), lambda i: (0, 0)),
                pl.BlockSpec((w, new_w_out), lambda i: (0, 0)),
                # TODO(synk): for strong downscales, a banded row-gather input
                # DMA (scalar-prefetched used-row offsets, compacted A_h) would
                # cut HBM reads ~(1 - 2*new_h/H); full rows for now.
                # TODO(synk): on v7x with small T_BLK, pipeline_mode=pl.Buffered(3)
                # on this spec would hide the large input block DMA.
                pl.BlockSpec((t_blk * h, w), lambda i: (i, 0)),
            ],
            out_specs=pl.BlockSpec((t_blk * new_h, new_w_out),
                                   lambda i: (i, 0)),
        ),
        compiler_params=pltpu.CompilerParams(
            dimension_semantics=("parallel",),
            vmem_limit_bytes=vmem_limit),
        cost_estimate=cost,
    )


def short_side_scale(x: jnp.ndarray, size: int,
                     compute_dtype=jnp.float32,
                     precision=None) -> jnp.ndarray:
    """Pallas implementation of pytorchvideo ShortSideScale.forward.

    precision: optional lax.Precision for the in-kernel matmuls; pass
    jax.lax.Precision.HIGHEST for PyTorch-fp32-grade parity (near-free on
    HBM-bound v6e).  Default uses the MXU's default (bf16-grade) f32 pass.
    """
    assert x.ndim == 4, "expected (C, T, H, W)"
    assert x.dtype == jnp.float32
    c, t, h, w = x.shape
    if w < h:
        new_h = int(math.floor((float(h) / w) * size))
        new_w = size
    else:
        new_h = size
        new_w = int(math.floor((float(w) / h) * size))

    a_h = _interp_matrix(new_h, h)          # (new_h, H)
    a_w_t = _interp_matrix(new_w, w).T      # (W, new_w): pre-transposed

    # Lane-dense output stores: always round the output width up to a full
    # multiple of 128 lanes (zero weight columns), slice it off afterwards.
    new_w_out = ((new_w + 127) // 128) * 128
    if new_w_out != new_w:
        a_w_t = jnp.pad(a_w_t, ((0, 0), (0, new_w_out - new_w)))

    a_h = a_h.astype(compute_dtype)
    a_w_t = a_w_t.astype(compute_dtype)

    # Contract the cheaper side first (fewest MACs, smallest fused temp).
    macs_w_first = h * new_w_out * (w + new_h)
    macs_h_first = new_h * w * (h + new_w_out)
    w_first = macs_w_first < macs_h_first

    vmem_limit = _vmem_limit_bytes()
    n_frames = c * t
    t_blk = _pick_t_blk(n_frames, h, w, new_h, new_w_out, w_first, vmem_limit)

    # Flattened view over all frames: free reshape of a contiguous array,
    # keeps W on lanes.
    x2 = x.reshape(n_frames * h, w)

    call = _build_call(n_frames, h, w, new_h, new_w_out, t_blk, w_first,
                       x.dtype, vmem_limit, precision)
    out = call(a_h, a_w_t, x2)

    if new_w_out != new_w:
        out = out[:, :new_w]
    return out.reshape(c, t, new_h, new_w)


class ShortSideScale:
    """JAX/Pallas equivalent of pytorchvideo.transforms.ShortSideScale."""

    def __init__(self, size: int):
        self._size = size

    def __call__(self, x: jnp.ndarray) -> jnp.ndarray:
        return short_side_scale(x, self._size)


def _reference(x, new_h, new_w):
    h, w = x.shape[-2:]
    a_h = _interp_matrix(new_h, h)
    a_w = _interp_matrix(new_w, w)
    return jnp.einsum("oh,cthw,pw->ctop", a_h, x, a_w,
                      precision=jax.lax.Precision.HIGHEST)


if __name__ == "__main__":
    key = jax.random.PRNGKey(0)

    # Case 1: downscale, short side = W, h-first contraction, 2 grid steps.
    C, T, H, W = 3, 8, 16, 12
    size = 8                            # -> new_w = 8, new_h = floor(16/12*8) = 10
    x1 = jax.random.normal(key, (C, T, H, W), dtype=jnp.float32)
    out1 = jax.block_until_ready(ShortSideScale(size)(x1))
    assert out1.shape == (C, T, 10, 8), out1.shape
    ref1 = _reference(x1, 10, 8)
    err1 = float(jnp.max(jnp.abs(out1 - ref1)))
    # Default MXU precision (bf16-grade f32 pass) -> loose-ish tolerance; pass
    # precision=jax.lax.Precision.HIGHEST for bit-closeness to PyTorch fp32.
    assert err1 < 5e-2, err1

    # Case 2: upscale, short side = H, w-first contraction.
    C2, T2, H2, W2 = 2, 2, 8, 16
    size2 = 32                          # -> new_h = 32, new_w = floor(16/8*32) = 64
    x2 = jax.random.normal(jax.random.PRNGKey(1), (C2, T2, H2, W2),
                           dtype=jnp.float32)
    out2 = jax.block_until_ready(ShortSideScale(size2)(x2))
    assert out2.shape == (C2, T2, 32, 64), out2.shape
    ref2 = _reference(x2, 32, 64)
    err2 = float(jnp.max(jnp.abs(out2 - ref2)))
    assert err2 < 5e-2, err2

    print("KERNEL_OK")
</pallas_src>

<mosaic_0001>
module attributes {stable_mosaic.version = 11 : i64} {
  func.func @kernel(%arg0: i32, %arg1: memref<10x16xf32, #tpu.memory_space<vmem>>, %arg2: memref<12x128xf32, #tpu.memory_space<vmem>>, %arg3: memref<192x12xf32, #tpu.memory_space<vmem>>, %arg4: memref<120x128xf32, #tpu.memory_space<vmem>>) attributes {dimension_semantics = [#tpu.dimension_semantics<parallel>], iteration_bounds = array<i64: 2>, scalar_prefetch = 0 : i64, scratch_operands = 0 : i64, tpu.core_type = #tpu.core_type<tc>, window_params = [{pipeline_mode = #tpu.pipeline_mode<synchronous>, transform_indices = @transform_0, window_bounds = array<i64: 10, 16>}, {pipeline_mode = #tpu.pipeline_mode<synchronous>, transform_indices = @transform_1, window_bounds = array<i64: 12, 128>}, {transform_indices = @transform_2, window_bounds = array<i64: 192, 12>}, {transform_indices = @transform_3, window_bounds = array<i64: 120, 128>}]} {
    %c0 = arith.constant 0 : index
    %c0_0 = arith.constant 0 : index
    %0 = vector.load %arg1[%c0, %c0_0] : memref<10x16xf32, #tpu.memory_space<vmem>>, vector<10x16xf32>
    %c0_1 = arith.constant 0 : index
    %c0_2 = arith.constant 0 : index
    %1 = vector.load %arg2[%c0_1, %c0_2] : memref<12x128xf32, #tpu.memory_space<vmem>>, vector<12x128xf32>
    %c0_i32 = arith.constant 0 : i32
    %c16_i32 = arith.constant 16 : i32
    %2 = arith.muli %c0_i32, %c16_i32 : i32
    %3 = tpu.assume_multiple %2, 16 : i32
    %c10_i32 = arith.constant 10 : i32
    %4 = arith.muli %c0_i32, %c10_i32 : i32
    %5 = tpu.assume_multiple %4, 10 : i32
    %6 = arith.index_cast %3 : i32 to index
    %c0_3 = arith.constant 0 : index
    %7 = vector.load %arg3[%6, %c0_3] : memref<192x12xf32, #tpu.memory_space<vmem>>, vector<16x12xf32>
    %cst = arith.constant dense<0.000000e+00> : vector<10x12xf32>
    %8 = tpu.matmul %0, %7, %cst {dimension_numbers = #tpu.dot_dimension_numbers<[1], [0], [0], [1], [0, 0, 1, 1], [], []>} : vector<10x16xf32>, vector<16x12xf32>, vector<10x12xf32> -> vector<10x12xf32>
    %cst_4 = arith.constant dense<0.000000e+00> : vector<10x128xf32>
    %9 = tpu.matmul %8, %1, %cst_4 {dimension_numbers = #tpu.dot_dimension_numbers<[1], [0], [0], [1], [0, 0, 1, 1], [], []>} : vector<10x12xf32>, vector<12x128xf32>, vector<10x128xf32> -> vector<10x128xf32>
    %10 = arith.index_cast %5 : i32 to index
    %c0_5 = arith.constant 0 : index
    %11 = vector.load %arg4[%10, %c0_5] : memref<120x128xf32, #tpu.memory_space<vmem>>, vector<10x128xf32>
    tpu.vector_store %arg4[%10, %c0_5], %9 {strides = array<i32>} : memref<120x128xf32, #tpu.memory_space<vmem>>, vector<10x128xf32>,
    %c1_i32 = arith.constant 1 : i32
    %c16_i32_6 = arith.constant 16 : i32
    %12 = arith.muli %c1_i32, %c16_i32_6 : i32
    %13 = tpu.assume_multiple %12, 16 : i32
    %c10_i32_7 = arith.constant 10 : i32
    %14 = arith.muli %c1_i32, %c10_i32_7 : i32
    %15 = tpu.assume_multiple %14, 10 : i32
    %16 = arith.index_cast %13 : i32 to index
    %c0_8 = arith.constant 0 : index
    %17 = vector.load %arg3[%16, %c0_8] : memref<192x12xf32, #tpu.memory_space<vmem>>, vector<16x12xf32>
    %cst_9 = arith.constant dense<0.000000e+00> : vector<10x12xf32>
    %18 = tpu.matmul %0, %17, %cst_9 {dimension_numbers = #tpu.dot_dimension_numbers<[1], [0], [0], [1], [0, 0, 1, 1], [], []>} : vector<10x16xf32>, vector<16x12xf32>, vector<10x12xf32> -> vector<10x12xf32>
    %cst_10 = arith.constant dense<0.000000e+00> : vector<10x128xf32>
    %19 = tpu.matmul %18, %1, %cst_10 {dimension_numbers = #tpu.dot_dimension_numbers<[1], [0], [0], [1], [0, 0, 1, 1], [], []>} : vector<10x12xf32>, vector<12x128xf32>, vector<10x128xf32> -> vector<10x128xf32>
    %20 = arith.index_cast %15 : i32 to index
    %c0_11 = arith.constant 0 : index
    %21 = vector.load %arg4[%20, %c0_11] : memref<120x128xf32, #tpu.memory_space<vmem>>, vector<10x128xf32>
    tpu.vector_store %arg4[%20, %c0_11], %19 {strides = array<i32>} : memref<120x128xf32, #tpu.memory_space<vmem>>, vector<10x128xf32>,
    %c2_i32 = arith.constant 2 : i32
    %c16_i32_12 = arith.constant 16 : i32
    %22 = arith.muli %c2_i32, %c16_i32_12 : i32
    %23 = tpu.assume_multiple %22, 16 : i32
    %c10_i32_13 = arith.constant 10 : i32
    %24 = arith.muli %c2_i32, %c10_i32_13 : i32
    %25 = tpu.assume_multiple %24, 10 : i32
    %26 = arith.index_cast %23 : i32 to index
    %c0_14 = arith.constant 0 : index
    %27 = vector.load %arg3[%26, %c0_14] : memref<192x12xf32, #tpu.memory_space<vmem>>, vector<16x12xf32>
    %cst_15 = arith.constant dense<0.000000e+00> : vector<10x12xf32>
    %28 = tpu.matmul %0, %27, %cst_15 {dimension_numbers = #tpu.dot_dimension_numbers<[1], [0], [0], [1], [0, 0, 1, 1], [], []>} : vector<10x16xf32>, vector<16x12xf32>, vector<10x12xf32> -> vector<10x12xf32>
    %cst_16 = arith.constant dense<0.000000e+00> : vector<10x128xf32>
    %29 = tpu.matmul %28, %1, %cst_16 {dimension_numbers = #tpu.dot_dimension_numbers<[1], [0], [0], [1], [0, 0, 1, 1], [], []>} : vector<10x12xf32>, vector<12x128xf32>, vector<10x128xf32> -> vector<10x128xf32>
    %30 = arith.index_cast %25 : i32 to index
    %c0_17 = arith.constant 0 : index
    %31 = vector.load %arg4[%30, %c0_17] : memref<120x128xf32, #tpu.memory_space<vmem>>, vector<10x128xf32>
    tpu.vector_store %arg4[%30, %c0_17], %29 {strides = array<i32>} : memref<120x128xf32, #tpu.memory_space<vmem>>, vector<10x128xf32>,
    %c3_i32 = arith.constant 3 : i32
    %c16_i32_18 = arith.constant 16 : i32
    %32 = arith.muli %c3_i32, %c16_i32_18 : i32
    %33 = tpu.assume_multiple %32, 16 : i32
    %c10_i32_19 = arith.constant 10 : i32
    %34 = arith.muli %c3_i32, %c10_i32_19 : i32
    %35 = tpu.assume_multiple %34, 10 : i32
    %36 = arith.index_cast %33 : i32 to index
    %c0_20 = arith.constant 0 : index
    %37 = vector.load %arg3[%36, %c0_20] : memref<192x12xf32, #tpu.memory_space<vmem>>, vector<16x12xf32>
    %cst_21 = arith.constant dense<0.000000e+00> : vector<10x12xf32>
    %38 = tpu.matmul %0, %37, %cst_21 {dimension_numbers = #tpu.dot_dimension_numbers<[1], [0], [0], [1], [0, 0, 1, 1], [], []>} : vector<10x16xf32>, vector<16x12xf32>, vector<10x12xf32> -> vector<10x12xf32>
    %cst_22 = arith.constant dense<0.000000e+00> : vector<10x128xf32>
    %39 = tpu.matmul %38, %1, %cst_22 {dimension_numbers = #tpu.dot_dimension_numbers<[1], [0], [0], [1], [0, 0, 1, 1], [], []>} : vector<10x12xf32>, vector<12x128xf32>, vector<10x128xf32> -> vector<10x128xf32>
    %40 = arith.index_cast %35 : i32 to index
    %c0_23 = arith.constant 0 : index
    %41 = vector.load %arg4[%40, %c0_23] : memref<120x128xf32, #tpu.memory_space<vmem>>, vector<10x128xf32>
    tpu.vector_store %arg4[%40, %c0_23], %39 {strides = array<i32>} : memref<120x128xf32, #tpu.memory_space<vmem>>, vector<10x128xf32>,
    %c4_i32 = arith.constant 4 : i32
    %c16_i32_24 = arith.constant 16 : i32
    %42 = arith.muli %c4_i32, %c16_i32_24 : i32
    %43 = tpu.assume_multiple %42, 16 : i32
    %c10_i32_25 = arith.constant 10 : i32
    %44 = arith.muli %c4_i32, %c10_i32_25 : i32
    %45 = tpu.assume_multiple %44, 10 : i32
    %46 = arith.index_cast %43 : i32 to index
    %c0_26 = arith.constant 0 : index
    %47 = vector.load %arg3[%46, %c0_26] : memref<192x12xf32, #tpu.memory_space<vmem>>, vector<16x12xf32>
    %cst_27 = arith.constant dense<0.000000e+00> : vector<10x12xf32>
    %48 = tpu.matmul %0, %47, %cst_27 {dimension_numbers = #tpu.dot_dimension_numbers<[1], [0], [0], [1], [0, 0, 1, 1], [], []>} : vector<10x16xf32>, vector<16x12xf32>, vector<10x12xf32> -> vector<10x12xf32>
    %cst_28 = arith.constant dense<0.000000e+00> : vector<10x128xf32>
    %49 = tpu.matmul %48, %1, %cst_28 {dimension_numbers = #tpu.dot_dimension_numbers<[1], [0], [0], [1], [0, 0, 1, 1], [], []>} : vector<10x12xf32>, vector<12x128xf32>, vector<10x128xf32> -> vector<10x128xf32>
    %50 = arith.index_cast %45 : i32 to index
    %c0_29 = arith.constant 0 : index
    %51 = vector.load %arg4[%50, %c0_29] : memref<120x128xf32, #tpu.memory_space<vmem>>, vector<10x128xf32>
    tpu.vector_store %arg4[%50, %c0_29], %49 {strides = array<i32>} : memref<120x128xf32, #tpu.memory_space<vmem>>, vector<10x128xf32>,
    %c5_i32 = arith.constant 5 : i32
    %c16_i32_30 = arith.constant 16 : i32
    %52 = arith.muli %c5_i32, %c16_i32_30 : i32
    %53 = tpu.assume_multiple %52, 16 : i32
    %c10_i32_31 = arith.constant 10 : i32
    %54 = arith.muli %c5_i32, %c10_i32_31 : i32
    %55 = tpu.assume_multiple %54, 10 : i32
    %56 = arith.index_cast %53 : i32 to index
    %c0_32 = arith.constant 0 : index
    %57 = vector.load %arg3[%56, %c0_32] : memref<192x12xf32, #tpu.memory_space<vmem>>, vector<16x12xf32>
    %cst_33 = arith.constant dense<0.000000e+00> : vector<10x12xf32>
    %58 = tpu.matmul %0, %57, %cst_33 {dimension_numbers = #tpu.dot_dimension_numbers<[1], [0], [0], [1], [0, 0, 1, 1], [], []>} : vector<10x16xf32>, vector<16x12xf32>, vector<10x12xf32> -> vector<10x12xf32>
    %cst_34 = arith.constant dense<0.000000e+00> : vector<10x128xf32>
    %59 = tpu.matmul %58, %1, %cst_34 {dimension_numbers = #tpu.dot_dimension_numbers<[1], [0], [0], [1], [0, 0, 1, 1], [], []>} : vector<10x12xf32>, vector<12x128xf32>, vector<10x128xf32> -> vector<10x128xf32>
    %60 = arith.index_cast %55 : i32 to index
    %c0_35 = arith.constant 0 : index
    %61 = vector.load %arg4[%60, %c0_35] : memref<120x128xf32, #tpu.memory_space<vmem>>, vector<10x128xf32>
    tpu.vector_store %arg4[%60, %c0_35], %59 {strides = array<i32>} : memref<120x128xf32, #tpu.memory_space<vmem>>, vector<10x128xf32>,
    %c6_i32 = arith.constant 6 : i32
    %c16_i32_36 = arith.constant 16 : i32
    %62 = arith.muli %c6_i32, %c16_i32_36 : i32
    %63 = tpu.assume_multiple %62, 16 : i32
    %c10_i32_37 = arith.constant 10 : i32
    %64 = arith.muli %c6_i32, %c10_i32_37 : i32
    %65 = tpu.assume_multiple %64, 10 : i32
    %66 = arith.index_cast %63 : i32 to index
    %c0_38 = arith.constant 0 : index
    %67 = vector.load %arg3[%66, %c0_38] : memref<192x12xf32, #tpu.memory_space<vmem>>, vector<16x12xf32>
    %cst_39 = arith.constant dense<0.000000e+00> : vector<10x12xf32>
    %68 = tpu.matmul %0, %67, %cst_39 {dimension_numbers = #tpu.dot_dimension_numbers<[1], [0], [0], [1], [0, 0, 1, 1], [], []>} : vector<10x16xf32>, vector<16x12xf32>, vector<10x12xf32> -> vector<10x12xf32>
    %cst_40 = arith.constant dense<0.000000e+00> : vector<10x128xf32>
    %69 = tpu.matmul %68, %1, %cst_40 {dimension_numbers = #tpu.dot_dimension_numbers<[1], [0], [0], [1], [0, 0, 1, 1], [], []>} : vector<10x12xf32>, vector<12x128xf32>, vector<10x128xf32> -> vector<10x128xf32>
    %70 = arith.index_cast %65 : i32 to index
    %c0_41 = arith.constant 0 : index
    %71 = vector.load %arg4[%70, %c0_41] : memref<120x128xf32, #tpu.memory_space<vmem>>, vector<10x128xf32>
    tpu.vector_store %arg4[%70, %c0_41], %69 {strides = array<i32>} : memref<120x128xf32, #tpu.memory_space<vmem>>, vector<10x128xf32>,
    %c7_i32 = arith.constant 7 : i32
    %c16_i32_42 = arith.constant 16 : i32
    %72 = arith.muli %c7_i32, %c16_i32_42 : i32
    %73 = tpu.assume_multiple %72, 16 : i32
    %c10_i32_43 = arith.constant 10 : i32
    %74 = arith.muli %c7_i32, %c10_i32_43 : i32
    %75 = tpu.assume_multiple %74, 10 : i32
    %76 = arith.index_cast %73 : i32 to index
    %c0_44 = arith.constant 0 : index
    %77 = vector.load %arg3[%76, %c0_44] : memref<192x12xf32, #tpu.memory_space<vmem>>, vector<16x12xf32>
    %cst_45 = arith.constant dense<0.000000e+00> : vector<10x12xf32>
    %78 = tpu.matmul %0, %77, %cst_45 {dimension_numbers = #tpu.dot_dimension_numbers<[1], [0], [0], [1], [0, 0, 1, 1], [], []>} : vector<10x16xf32>, vector<16x12xf32>, vector<10x12xf32> -> vector<10x12xf32>
    %cst_46 = arith.constant dense<0.000000e+00> : vector<10x128xf32>
    %79 = tpu.matmul %78, %1, %cst_46 {dimension_numbers = #tpu.dot_dimension_numbers<[1], [0], [0], [1], [0, 0, 1, 1], [], []>} : vector<10x12xf32>, vector<12x128xf32>, vector<10x128xf32> -> vector<10x128xf32>
    %80 = arith.index_cast %75 : i32 to index
    %c0_47 = arith.constant 0 : index
    %81 = vector.load %arg4[%80, %c0_47] : memref<120x128xf32, #tpu.memory_space<vmem>>, vector<10x128xf32>
    tpu.vector_store %arg4[%80, %c0_47], %79 {strides = array<i32>} : memref<120x128xf32, #tpu.memory_space<vmem>>, vector<10x128xf32>,
    %c8_i32 = arith.constant 8 : i32
    %c16_i32_48 = arith.constant 16 : i32
    %82 = arith.muli %c8_i32, %c16_i32_48 : i32
    %83 = tpu.assume_multiple %82, 16 : i32
    %c10_i32_49 = arith.constant 10 : i32
    %84 = arith.muli %c8_i32, %c10_i32_49 : i32
    %85 = tpu.assume_multiple %84, 10 : i32
    %86 = arith.index_cast %83 : i32 to index
    %c0_50 = arith.constant 0 : index
    %87 = vector.load %arg3[%86, %c0_50] : memref<192x12xf32, #tpu.memory_space<vmem>>, vector<16x12xf32>
    %cst_51 = arith.constant dense<0.000000e+00> : vector<10x12xf32>
    %88 = tpu.matmul %0, %87, %cst_51 {dimension_numbers = #tpu.dot_dimension_numbers<[1], [0], [0], [1], [0, 0, 1, 1], [], []>} : vector<10x16xf32>, vector<16x12xf32>, vector<10x12xf32> -> vector<10x12xf32>
    %cst_52 = arith.constant dense<0.000000e+00> : vector<10x128xf32>
    %89 = tpu.matmul %88, %1, %cst_52 {dimension_numbers = #tpu.dot_dimension_numbers<[1], [0], [0], [1], [0, 0, 1, 1], [], []>} : vector<10x12xf32>, vector<12x128xf32>, vector<10x128xf32> -> vector<10x128xf32>
    %90 = arith.index_cast %85 : i32 to index
    %c0_53 = arith.constant 0 : index
    %91 = vector.load %arg4[%90, %c0_53] : memref<120x128xf32, #tpu.memory_space<vmem>>, vector<10x128xf32>
    tpu.vector_store %arg4[%90, %c0_53], %89 {strides = array<i32>} : memref<120x128xf32, #tpu.memory_space<vmem>>, vector<10x128xf32>,
    %c9_i32 = arith.constant 9 : i32
    %c16_i32_54 = arith.constant 16 : i32
    %92 = arith.muli %c9_i32, %c16_i32_54 : i32
    %93 = tpu.assume_multiple %92, 16 : i32
    %c10_i32_55 = arith.constant 10 : i32
    %94 = arith.muli %c9_i32, %c10_i32_55 : i32
    %95 = tpu.assume_multiple %94, 10 : i32
    %96 = arith.index_cast %93 : i32 to index
    %c0_56 = arith.constant 0 : index
    %97 = vector.load %arg3[%96, %c0_56] : memref<192x12xf32, #tpu.memory_space<vmem>>, vector<16x12xf32>
    %cst_57 = arith.constant dense<0.000000e+00> : vector<10x12xf32>
    %98 = tpu.matmul %0, %97, %cst_57 {dimension_numbers = #tpu.dot_dimension_numbers<[1], [0], [0], [1], [0, 0, 1, 1], [], []>} : vector<10x16xf32>, vector<16x12xf32>, vector<10x12xf32> -> vector<10x12xf32>
    %cst_58 = arith.constant dense<0.000000e+00> : vector<10x128xf32>
    %99 = tpu.matmul %98, %1, %cst_58 {dimension_numbers = #tpu.dot_dimension_numbers<[1], [0], [0], [1], [0, 0, 1, 1], [], []>} : vector<10x12xf32>, vector<12x128xf32>, vector<10x128xf32> -> vector<10x128xf32>
    %100 = arith.index_cast %95 : i32 to index
    %c0_59 = arith.constant 0 : index
    %101 = vector.load %arg4[%100, %c0_59] : memref<120x128xf32, #tpu.memory_space<vmem>>, vector<10x128xf32>
    tpu.vector_store %arg4[%100, %c0_59], %99 {strides = array<i32>} : memref<120x128xf32, #tpu.memory_space<vmem>>, vector<10x128xf32>,
    %c10_i32_60 = arith.constant 10 : i32
    %c16_i32_61 = arith.constant 16 : i32
    %102 = arith.muli %c10_i32_60, %c16_i32_61 : i32
    %103 = tpu.assume_multiple %102, 16 : i32
    %c10_i32_62 = arith.constant 10 : i32
    %104 = arith.muli %c10_i32_60, %c10_i32_62 : i32
    %105 = tpu.assume_multiple %104, 10 : i32
    %106 = arith.index_cast %103 : i32 to index
    %c0_63 = arith.constant 0 : index
    %107 = vector.load %arg3[%106, %c0_63] : memref<192x12xf32, #tpu.memory_space<vmem>>, vector<16x12xf32>
    %cst_64 = arith.constant dense<0.000000e+00> : vector<10x12xf32>
    %108 = tpu.matmul %0, %107, %cst_64 {dimension_numbers = #tpu.dot_dimension_numbers<[1], [0], [0], [1], [0, 0, 1, 1], [], []>} : vector<10x16xf32>, vector<16x12xf32>, vector<10x12xf32> -> vector<10x12xf32>
    %cst_65 = arith.constant dense<0.000000e+00> : vector<10x128xf32>
    %109 = tpu.matmul %108, %1, %cst_65 {dimension_numbers = #tpu.dot_dimension_numbers<[1], [0], [0], [1], [0, 0, 1, 1], [], []>} : vector<10x12xf32>, vector<12x128xf32>, vector<10x128xf32> -> vector<10x128xf32>
    %110 = arith.index_cast %105 : i32 to index
    %c0_66 = arith.constant 0 : index
    %111 = vector.load %arg4[%110, %c0_66] : memref<120x128xf32, #tpu.memory_space<vmem>>, vector<10x128xf32>
    tpu.vector_store %arg4[%110, %c0_66], %109 {strides = array<i32>} : memref<120x128xf32, #tpu.memory_space<vmem>>, vector<10x128xf32>,
    %c11_i32 = arith.constant 11 : i32
    %c16_i32_67 = arith.constant 16 : i32
    %112 = arith.muli %c11_i32, %c16_i32_67 : i32
    %113 = tpu.assume_multiple %112, 16 : i32
    %c10_i32_68 = arith.constant 10 : i32
    %114 = arith.muli %c11_i32, %c10_i32_68 : i32
    %115 = tpu.assume_multiple %114, 10 : i32
    %116 = arith.index_cast %113 : i32 to index
    %c0_69 = arith.constant 0 : index
    %117 = vector.load %arg3[%116, %c0_69] : memref<192x12xf32, #tpu.memory_space<vmem>>, vector<16x12xf32>
    %cst_70 = arith.constant dense<0.000000e+00> : vector<10x12xf32>
    %118 = tpu.matmul %0, %117, %cst_70 {dimension_numbers = #tpu.dot_dimension_numbers<[1], [0], [0], [1], [0, 0, 1, 1], [], []>} : vector<10x16xf32>, vector<16x12xf32>, vector<10x12xf32> -> vector<10x12xf32>
    %cst_71 = arith.constant dense<0.000000e+00> : vector<10x128xf32>
    %119 = tpu.matmul %118, %1, %cst_71 {dimension_numbers = #tpu.dot_dimension_numbers<[1], [0], [0], [1], [0, 0, 1, 1], [], []>} : vector<10x12xf32>, vector<12x128xf32>, vector<10x128xf32> -> vector<10x128xf32>
    %120 = arith.index_cast %115 : i32 to index
    %c0_72 = arith.constant 0 : index
    %121 = vector.load %arg4[%120, %c0_72] : memref<120x128xf32, #tpu.memory_space<vmem>>, vector<10x128xf32>
    tpu.vector_store %arg4[%120, %c0_72], %119 {strides = array<i32>} : memref<120x128xf32, #tpu.memory_space<vmem>>, vector<10x128xf32>,
    %c12_i32 = arith.constant 12 : i32
    return
  }
  func.func @transform_0(%arg0: i32) -> (i32, i32) {
    %c0_i32 = arith.constant 0 : i32
    %c0_i32_0 = arith.constant 0 : i32
    %c0_i32_1 = arith.constant 0 : i32
    return %c0_i32, %c0_i32_0 : i32, i32
  }
  func.func @transform_1(%arg0: i32) -> (i32, i32) {
    %c0_i32 = arith.constant 0 : i32
    %c0_i32_0 = arith.constant 0 : i32
    %c0_i32_1 = arith.constant 0 : i32
    return %c0_i32, %c0_i32_0 : i32, i32
  }
  func.func @transform_2(%arg0: i32) -> (i32, i32) {
    %c0_i32 = arith.constant 0 : i32
    %c0_i32_0 = arith.constant 0 : i32
    return %arg0, %c0_i32 : i32, i32
  }
  func.func @transform_3(%arg0: i32) -> (i32, i32) {
    %c0_i32 = arith.constant 0 : i32
    %c0_i32_0 = arith.constant 0 : i32
    return %arg0, %c0_i32 : i32, i32
  }
}

</mosaic_0001>

<bundles_post_ra>
// kernel: tpu_custom_call.1
= control target key start
LH: loop header
LB: loop body
LE: loop exit
PB: predicated region body
PF: predicated region fallthrough
CT: control target
= control target key end

     0   :  { %8 = vsyncpa [#allocation3], 0  ;;  %s3498_s0 = inlined_call_operand.hbm [shape: f32[10,16], index: 0, kind: input, shape index: {}]   ;;  %s3499_s1 = inlined_call_operand.hbm [shape: f32[12,128], index: 1, kind: input, shape index: {}]   ;;  %s3500_s2 = inlined_call_operand.hbm [shape: f32[384,12], index: 2, kind: input, shape index: {}]   ;;  %s3501_s3 = inlined_call_operand.hbm [shape: f32[240,128], index: 3, kind: output, shape index: {}]  }
   0x1   :  { %9 = vsyncpa [#allocation6], 0 }
   0x2   :  { %10 = vsyncpa [#allocation4], 0 }
   0x3   :  { %12 = vsyncpa [#allocation4 + $0x1], 0  ;;  %s3050_s12 = smov 0   ;;  %s3052_s13 = smov 0  }
   0x4   :  { %s3054_s14 = smov 0   ;;  %s3056_s15 = smov 0  }
   0x5 LB: > { %s3071_s16 = sadd.s32 4294967295, %s3019_s15   ;;  %s2282_s17 = sadd.s32 4294967294, %s3019_s15   ;;  %s3019_s15 = sphi %s3056_s15, %s3531_s15   ;;  %s3015_s14 = sphi %s3054_s14, %s3530_s14   ;;  %s3011_s13 = sphi %s3052_s13, %s3529_s13   ;;  %s3007_s12 = sphi %s3050_s12, %s3528_s12  }
   0x6   : > { %s3075_s18 = sadd.s32 1, %s3019_s15   ;;  %s67_s19 = sadd.s32 1, %s3015_s14 }
   0x7   : > { %s64_s20 = ssub.s32 %s3019_s15, %s3075_s18  ;;  %p74_p0 = scmp.ne.s32.totalorder %s3015_s14, %s3011_s13 }
   0x8   : > { %p65_p1 = scmp.eq.s32.totalorder %s64_s20, 0  ;;  %p75_p2 = scmp.eq.s32.totalorder %s3019_s15, 0 }
   0x9   : > { %p80_p3 = scmp.ne.s32.totalorder %s3011_s13, %s3007_s12  ;;  %p3502_p4 = scmp.eq.s32.totalorder %s3071_s16, 0 }
   0xa   : > { %s3087_s21 = scalar_select %p65_p1, %s3015_s14, %s67_s19  }
   0xb   : > { %p3089_p5 = por %p75_p2, %p74_p0  ;;  %p3095_p6 = por %p3502_p4, %p80_p3 }
   0xc   : > { %p104_p7 = scmp.eq.s32.totalorder %s3071_s16, 1  ;;  %p110_p8 = scmp.eq.s32.totalorder %s2282_s17, 1 }
   0xd   : > { %s3507_s22 = scalar_select %p3089_p5, 1, 0 }
   0xe   : > { %s3508_s23 = scalar_select %p3095_p6, 1, 0 }
   0xf   : > { %p2283_p9 = scmp.ge.s32.totalorder %s3019_s15, 1  ;;  %p117_p10 = scmp.lt.s32.totalorder %s3019_s15, 3 }
  0x10   : > { %p3102_p11 = por %p104_p7, %p74_p0  ;;  %p3106_p12 = por %p110_p8, %p80_p3 }
  0x11   : > { %p3110_p13 = pnand %p2283_p9, %p117_p10  ;;  %s3021_s27 = smov [#allocation2]  }
  0x12   : > { %s3509_s24 = scalar_select %p3102_p11, 1, 0 }
  0x13   : > { %s3510_s25 = scalar_select %p3106_p12, 1, 0 }
  0x14   : > { %s3511_s26 = scalar_select %p3110_p13, 1, 0 }
  0x15   : > { %p2799_p1 = pneg %p3110_p13  ;;  %s129_s28 = sshll.u32 %s3021_s27, 4  ;;  %s130_s28 = int_to_ptr.vmem [resolvable:$true] %s129_s28 }
  0x16   : > { %s3022_s30 = smov [#allocation5]   ;;  %s2859_s7 = scalar_lea.hbm %s3498_s0, 256 }
  0x17   : > { %p3118_p2 = pnand %p2799_p1, %p3502_p4  ;;  %s142_s4 = sshll.u32 %s3022_s30, 4  ;;  %s143_s4 = int_to_ptr.vmem [resolvable:$true] %s142_s4 }
  0x18   : > { %p2860_p7 = scmp.ne.s32.totalorder %s3498_s0, %s2859_s7  ;;  %p2866_p1 = scmp.lt.u32.totalorder %s2859_s7, %s3498_s0 }
  0x19   : > { %p2861_p8 = pneg %p3118_p2 }
  0x1b   : > { %p2862_p9 = pnand %p2861_p8, %p2860_p7 }
  0x1d   : > { %p2863_p10 = pneg %p2862_p9 }
  0x1f   : > { %p2868_p0 = pnand %p2866_p1, %p2863_p10 }
  0x21   : > { %2871 = shalt.err (!%p2868_p0)
}
  0x22   : > { %s2872_s17 = scalar_lea.vmem %s130_s28, 256  ;;  %p2880_p11 = scmp.lt.s32.totalorder %s130_s28, %s130_s28 }
  0x23   : > { %p2873_p4 = scmp.ne.s32.totalorder %s130_s28, %s2872_s17  ;;  %p2881_p6 = scmp.lt.s32.totalorder %s2872_s17, %s2872_s17 }
  0x25   : > { %p2875_p3 = pnand %p2873_p4, %p2861_p8  ;;  %p2882_p13 = por %p2881_p6, %p2880_p11 }
  0x27   : > { %p2876_p12 = pneg %p2875_p3 }
  0x29   : > { %p2883_p5 = pnand %p2882_p13, %p2876_p12 }
  0x2b   : > { %2886 = shalt.err (!%p2883_p5)
}
  0x2c   : > { %s3023_s19 = smov 128   ;;  %s3024_s20 = smov 8  }
  0x2d   : > { %2802 = dma.hbm_to_vmem [thread:$0]  (!%p3118_p2), %s3498_s0, 256, %s130_s28, [#allocation3], %s3023_s19, %s3023_s19, %s3024_s20  }
  0x2e   : > { %p3513_p4 = scmp.ne.s32.totalorder %s3507_s22, 0  ;;  %p3514_p0 = scmp.lt.s32.totalorder %s3019_s15, 2 }
  0x2f   : > { %s2887_s8 = scalar_lea.hbm %s3499_s1, 256 }
  0x30   : > { %p3153_p3 = pnand %p3514_p0, %p3513_p4  ;;  %p2888_p5 = scmp.ne.s32.totalorder %s3499_s1, %s2887_s8 }
  0x31   : > { %p2894_p12 = scmp.lt.u32.totalorder %s2887_s8, %s3499_s1 }
  0x32   : > { %s3515_s5 = scalar_select %p3153_p3, 1, 0 }
  0x33   : > { %p2890_p6 = pnand %p2888_p5, %p2861_p8 }
  0x35   : > { %p2891_p11 = pneg %p2890_p6 }
  0x37   : > { %p2896_p13 = pnand %p2894_p12, %p2891_p11 }
  0x39   : > { %2899 = shalt.err (!%p2896_p13)
}
  0x3a   : > { %s2900_s11 = scalar_lea.vmem %s143_s4, 256  ;;  %p2908_p1 = scmp.lt.s32.totalorder %s143_s4, %s143_s4 }
  0x3b   : > { %p2901_p7 = scmp.ne.s32.totalorder %s143_s4, %s2900_s11  ;;  %p2909_p4 = scmp.lt.s32.totalorder %s2900_s11, %s2900_s11 }
  0x3d   : > { %p2903_p9 = pnand %p2901_p7, %p2861_p8  ;;  %p2910_p0 = por %p2909_p4, %p2908_p1 }
  0x3f   : > { %p2904_p10 = pneg %p2903_p9 }
  0x41   : > { %p2911_p3 = pnand %p2910_p0, %p2904_p10 }
  0x43   : > { %2914 = shalt.err (!%p2911_p3)
}
  0x44   : > { %2805 = dma.hbm_to_vmem [thread:$0]  (!%p3118_p2), %s3499_s1, 256, %s143_s4, [#allocation6], %s3023_s19, %s3023_s19, %s3024_s20  }
  0x45   : > { %s156_s30 = sand.u32 1, %s3019_s15   ;;  %s158_s6 = sand.u32 1, %s3015_s14  }
  0x46   : > { %s2784_s7 = smul.u32 192, %s158_s6  ;;  %s3190_s11 = scalar_lea.sflag [#allocation3], %s156_s30 }
  0x47   : > { %s2398_s8 = smul.u32 3072, %s3019_s15  ;;  %p3516_p8 = scmp.ne.s32.totalorder %s3515_s5, 0 }
  0x48   : > { %s160_s28 = scalar_lea.vmem [#allocation7], %s2784_s7  ;;  %s2920_s6 = scalar_lea.hbm %s3500_s2, 6144 }
  0x49   : > { %s3186_s29 = scalar_lea.hbm %s3500_s2, %s2398_s8  ;;  %s167_s22 = sshll.u32 %s160_s28, 4  ;;  %s3188_s22 = int_to_ptr.vmem [resolvable:$true] %s167_s22 }
  0x4a   : > { %s2915_s4 = scalar_lea.hbm %s3186_s29, 3072  ;;  %p2917_p3 = pneg %p3516_p8 }
  0x4b   : > { %p2916_p2 = scmp.ne.s32.totalorder %s3186_s29, %s2915_s4  ;;  %p2921_p11 = scmp.lt.u32.totalorder %s3186_s29, %s3500_s2 }
  0x4c   : > { %p2922_p12 = scmp.lt.u32.totalorder %s2920_s6, %s2915_s4  ;;  %p2924_p7 = scmp.lt.u32.totalorder %s2915_s4, %s3186_s29 }
  0x4d   : > { %p2918_p5 = pnand %p2917_p3, %p2916_p2 }
  0x4e   : > { %p2923_p13 = por %p2922_p12, %p2921_p11 }
  0x4f   : > { %p2919_p6 = pneg %p2918_p5 }
  0x50   : > { %p2925_p9 = por %p2924_p7, %p2923_p13 }
  0x52   : > { %p2926_p10 = pnand %p2925_p9, %p2919_p6 }
  0x54   : > { %2929 = shalt.err (!%p2926_p10)
}
  0x55   : > { %s2930_s30 = scalar_lea.vmem %s3188_s22, 3072  ;;  %s3025_s7 = smov [#allocation7]  }
  0x56   : > { %p2931_p1 = scmp.ne.s32.totalorder %s3188_s22, %s2930_s30  ;;  %s2935_s10 = sshll.u32 %s3025_s7, 4  ;;  %s2936_s10 = int_to_ptr.vmem [resolvable:$false] %s2935_s10 }
  0x57   : > { %s2937_s28 = scalar_lea.vmem %s2936_s10, 6144  ;;  %p2938_p2 = scmp.lt.s32.totalorder %s3188_s22, %s2936_s10 }
  0x58   : > { %p2933_p4 = pnand %p2931_p1, %p2917_p3  ;;  %p2939_p5 = scmp.lt.s32.totalorder %s2937_s28, %s2930_s30 }
  0x5a   : > { %p2934_p0 = pneg %p2933_p4  ;;  %p2940_p11 = por %p2939_p5, %p2938_p2 }
  0x5c   : > { %p2941_p12 = pnand %p2940_p11, %p2934_p0 }
  0x5e   : > { %2944 = shalt.err (!%p2941_p12)
}
  0x5f   : > { %2809 = dma.hbm_to_vmem [thread:$0]  (!%p3516_p8), %s3186_s29, 3072, %s3188_s22, %s3190_s11, %s3023_s19, %s3023_s19, %s3024_s20  }
  0x60   : > { %p3517_p3 = scmp.ne.s32.totalorder %s3511_s26, 0 }
  0x61   : > { %p3518_p6 = scmp.eq.s32.totalorder (!%p3517_p3), %s3071_s16, 0 }
  0x62   : > { %179 = sbr.rel (%p3517_p3) target bundleno = 607 (0x25f), region = 32 }
  0x69   : > { %2990 = dma.done.wait (%p3518_p6), [#allocation3], 256   ;;  %p3519_p13 = pmov %p3518_p6 }
  0x6a   : > { %p3520_p7 = pmov %p3518_p6 }
  0x6b   : > { %2992 = vsyncadd (%p3519_p13), [#allocation3], 4294967040 }
  0x6c   : > { %2994 = dma.done.wait (%p3520_p7), [#allocation6], 256   ;;  %p3521_p9 = pmov %p3518_p6 }
  0x6d   : > { %s189_s5 = sand.u32 1, %s3071_s16   ;;  %s3233_s19 = sand.u32 1, %s3011_s13  }
  0x6e   : > { %2996 = vsyncadd (%p3521_p9), [#allocation6], 4294967040  ;;  %s2785_s26 = smul.u32 192, %s3233_s19  ;;  %s190_s20 = scalar_lea.sflag [#allocation3], %s189_s5 }
  0x6f   : > { %p3522_p8 = scmp.ne.s32.totalorder %s3508_s23, 0 }
  0x70   : > { %s3236_s29 = scalar_lea.vmem [#allocation7], %s2785_s26 }
  0x71   : > { %2998 = dma.done.wait (%p3522_p8), %s190_s20, 3072  }
  0x72   : > { %3000 = vsyncadd (%p3522_p8), %s190_s20, 4294964224  ;;  %vm224_vm0 = vcmask 130048   ;;  %v222_v0 = vld [vmem:[%s3236_s29] sm:$0xff]  ;;  %v223_v1 = vld [vmem:[%s3236_s29 + $0x8] sm:$0xff]  ;;  %vm313_vm1 = vcmask 1043456   ;;  %vm3026_vm2 = vmmov 1  }
  0x73   : > { %v3244_v2 = vld [vmem:[#allocation2] sm:$0xff]  ;;  %v2664_v3 = vpack.c.bf16 %v223_v1, %v222_v0  ;;  %v2296_v4 = vld [vmem:[%s3236_s29 + $0x10] sm:$0xff]  ;;  %v2297_v5 = vld [vmem:[%s3236_s29 + $0x18] sm:$0xff]  ;;  %vm306_vm4 = vcmask 97280   ;;  %s2786_s23 = smul.u32 120, %s3233_s19  ;;  %p3525_p1 = scmp.ne.s32.totalorder %s3509_s24, 0 }
  0x74   : > { %2500 = vmatprep.mubr.msk.f32.mxu0 %vm224_vm0, %v3244_v2  ;;  %v2674_v6 = vpack.c.bf16 %v2297_v5, %v2296_v4  ;;  %v2305_v7 = vld [vmem:[%s3236_s29 + $0x20] sm:$0xff]  ;;  %v2306_v8 = vld [vmem:[%s3236_s29 + $0x28] sm:$0xff]  ;;  %v2314_v11 = vld [vmem:[%s3236_s29 + $0x30] sm:$0xff]  ;;  %s2399_s11 = smul.u32 1920, %s3071_s16  ;;  %s2177_s16 = scalar_lea.sflag [#allocation4], %s3233_s19 }
  0x75   : > { %2665 = vmatprep.subr.bf16.mxu0 %v2664_v3  ;;  %v3252_v9 = vld [vmem:[#allocation2 + $0x8] sm:$0x3]  ;;  %v2684_v10 = vpack.c.bf16 %v2306_v8, %v2305_v7  ;;  %v2315_v12 = vld [vmem:[%s3236_s29 + $0x38] sm:$0xff]  ;;  %v220_v13 = vld [vmem:[#allocation5] sm:$0xff]  ;;  %s3421_s22 = scalar_lea.vmem [#allocation8], %s2786_s23  ;;  %s3027_s9 = smov [#allocation8]  }
  0x76   : > { %2667 = vmatpush3.bf16.msra.mxu0 %v2664_v3  ;;  %v2694_v14 = vpack.c.bf16 %v2315_v12, %v2314_v11  ;;  %v221_v15 = vld [vmem:[#allocation5 + $0x8] sm:$0xf]  ;;  %v2323_v16 = vld [vmem:[%s3236_s29 + $0x40] sm:$0xff]  ;;  %v2324_v17 = vld [vmem:[%s3236_s29 + $0x48] sm:$0xff]  ;;  %s2190_s4 = sshll.u32 %s3421_s22, 4  ;;  %s3450_s6 = scalar_lea.hbm %s3501_s3, %s2399_s11  ;;  %s3452_s4 = int_to_ptr.vmem [resolvable:$true] %s2190_s4 }
  0x77   : > { %2675 = vmatprep.subr.bf16.mxu0 %v2674_v6  ;;  %v3262_v18 = vpack.c.bf16 %v221_v15, %v220_v13  ;;  %vm3264_vm3 = vmpackc.low %vm313_vm1, %vm3026_vm2  ;;  %v2704_v20 = vpack.c.bf16 %v2324_v17, %v2323_v16  ;;  %v2332_v21 = vld [vmem:[%s3236_s29 + $0x50] sm:$0xff]  ;;  %v2333_v22 = vld [vmem:[%s3236_s29 + $0x58] sm:$0xff]  ;;  %s2945_s8 = scalar_lea.vmem %s3452_s4, 1920  ;;  %s2949_s30 = sshll.u32 %s3027_s9, 4  ;;  %s2950_s30 = int_to_ptr.vmem [resolvable:$false] %s2949_s30 }
  0x78   : > { %v2714_v23 = vpack.c.bf16 %v2333_v22, %v2332_v21  ;;  %v2341_v24 = vld [vmem:[%s3236_s29 + $0x60] sm:$0xff]  ;;  %v2342_v25 = vld [vmem:[%s3236_s29 + $0x68] sm:$0xff]  ;;  %v2350_v27 = vld [vmem:[%s3236_s29 + $0x70] sm:$0xff]  ;;  %p2946_p10 = scmp.ne.s32.totalorder %s3452_s4, %s2945_s8  ;;  %s2951_s7 = scalar_lea.vmem %s2950_s30, 3840 }
  0x79   : > { %2501 = vmatmul.mubr.msk.f32.vlgmr.msra.gmra.mrb[0].mxu0 %vm224_vm0, %v3252_v9  ;;  %2670 = vmatprep.subr.msk.bf16.mxu1 %vm3264_vm3, %v3262_v18  ;;  %v2724_v26 = vpack.c.bf16 %v2342_v25, %v2341_v24  ;;  %v2351_v28 = vld [vmem:[%s3236_s29 + $0x78] sm:$0xff]  ;;  %v2359_v30 = vld [vmem:[%s3236_s29 + $0x80] sm:$0xff]  ;;  %v2360_v31 = vld [vmem:[%s3236_s29 + $0x88] sm:$0xff]  ;;  %p2952_p2 = scmp.lt.s32.totalorder %s3452_s4, %s2950_s30  ;;  %p2953_p5 = scmp.lt.s32.totalorder %s2951_s7, %s2945_s8 }
  0x7a   : > { %2677 = vmatpush3.bf16.msra.mxu0 %v2674_v6  ;;  %2514 = vmatprep.mubr.msk.f32.mxu0 %vm224_vm0, %v3244_v2  ;;  %v2734_v29 = vpack.c.bf16 %v2351_v28, %v2350_v27  ;;  %v2744_v32 = vpack.c.bf16 %v2360_v31, %v2359_v30  ;;  %v2368_v33 = vld [vmem:[%s3236_s29 + $0x90] sm:$0xff]  ;;  %v2369_v34 = vld [vmem:[%s3236_s29 + $0x98] sm:$0xff]  ;;  %v2377_v36 = vld [vmem:[%s3236_s29 + $0xa0] sm:$0xff]  ;;  %p2947_p4 = pnand %p2946_p10, %p3525_p1 }
  0x7b   : > { %2685 = vmatprep.subr.bf16.mxu0 %v2684_v10  ;;  %2673 = vmatpush3.bf16.msk.msra.mxu1 %vm3264_vm3, %v3262_v18  ;;  %v2754_v35 = vpack.c.bf16 %v2369_v34, %v2368_v33  ;;  %v2378_v37 = vld [vmem:[%s3236_s29 + $0xa8] sm:$0xff]  ;;  %v2386_v39 = vld [vmem:[%s3236_s29 + $0xb0] sm:$0xff]  ;;  %v2387_v40 = vld [vmem:[%s3236_s29 + $0xb8] sm:$0xff]  ;;  %p2954_p11 = por %p2953_p5, %p2952_p2 }
  0x7c   : > { %2680 = vmatprep.subr.msk.bf16.mxu1 %vm3264_vm3, %v3262_v18  ;;  %v2764_v38 = vpack.c.bf16 %v2378_v37, %v2377_v36  ;;  %v2774_v41 = vpack.c.bf16 %v2387_v40, %v2386_v39  ;;  %p2948_p0 = pneg %p2947_p4 }
  0x7d   : > { %2515 = vmatmul.mubr.msk.f32.vlgmr.msra.gmra.mrb[2].mxu0 %vm224_vm0, %v3252_v9 }
  0x7e   : > { %2687 = vmatpush3.bf16.msra.mxu0 %v2684_v10  ;;  %2528 = vmatprep.mubr.msk.f32.mxu0 %vm224_vm0, %v3244_v2  ;;  %p2955_p12 = pnand %p2954_p11, %p2948_p0 }
  0x7f   : > { %2695 = vmatprep.subr.bf16.mxu0 %v2694_v14 }
  0x81   : > { %2529 = vmatmul.mubr.msk.f32.vlgmr.msra.gmra.mrb[4].mxu0 %vm224_vm0, %v3252_v9 }
  0x82   : > { %2697 = vmatpush3.bf16.msra.mxu0 %v2694_v14  ;;  %2542 = vmatprep.mubr.msk.f32.mxu0 %vm224_vm0, %v3244_v2 }
  0x83   : > { %2705 = vmatprep.subr.bf16.mxu0 %v2704_v20 }
  0x85   : > { %2543 = vmatmul.mubr.msk.f32.vlgmr.msra.gmra.mrb[6].mxu0 %vm224_vm0, %v3252_v9 }
  0x86   : > { %2707 = vmatpush3.bf16.msra.mxu0 %v2704_v20  ;;  %2556 = vmatprep.mubr.msk.f32.mxu0 %vm224_vm0, %v3244_v2 }
  0x87   : > { %2715 = vmatprep.subr.bf16.mxu0 %v2714_v23 }
  0x89   : > { %2557 = vmatmul.mubr.msk.f32.vlgmr.msra.gmra.mrb[8].mxu0 %vm224_vm0, %v3252_v9 }
  0x8a   : > { %2717 = vmatpush3.bf16.msra.mxu0 %v2714_v23  ;;  %2570 = vmatprep.mubr.msk.f32.mxu0 %vm224_vm0, %v3244_v2 }
  0x8b   : > { %2725 = vmatprep.subr.bf16.mxu0 %v2724_v26 }
  0x8d   : > { %2571 = vmatmul.mubr.msk.f32.vlgmr.msra.gmra.mrb[10].mxu0 %vm224_vm0, %v3252_v9 }
  0x8e   : > { %2727 = vmatpush3.bf16.msra.mxu0 %v2724_v26  ;;  %2584 = vmatprep.mubr.msk.f32.mxu0 %vm224_vm0, %v3244_v2 }
  0x8f   : > { %2735 = vmatprep.subr.bf16.mxu0 %v2734_v29 }
  0x91   : > { %2585 = vmatmul.mubr.msk.f32.vlgmr.msra.gmra.mrb[12].mxu0 %vm224_vm0, %v3252_v9 }
  0x92   : > { %2737 = vmatpush3.bf16.msra.mxu0 %v2734_v29  ;;  %2598 = vmatprep.mubr.msk.f32.mxu0 %vm224_vm0, %v3244_v2 }
  0x93   : > { %2745 = vmatprep.subr.bf16.mxu0 %v2744_v32 }
  0x95   : > { %2599 = vmatmul.mubr.msk.f32.vlgmr.msra.gmra.mrb[14].mxu0 %vm224_vm0, %v3252_v9 }
  0x96   : > { %2747 = vmatpush3.bf16.msra.mxu0 %v2744_v32  ;;  %2612 = vmatprep.mubr.msk.f32.mxu0 %vm224_vm0, %v3244_v2 }
  0x97   : > { %2755 = vmatprep.subr.bf16.mxu0 %v2754_v35 }
  0x99   : > { %2613 = vmatmul.mubr.msk.f32.vlgmr.msra.gmra.mrb[16].mxu0 %vm224_vm0, %v3252_v9 }
  0x9a   : > { %2757 = vmatpush3.bf16.msra.mxu0 %v2754_v35  ;;  %2626 = vmatprep.mubr.msk.f32.mxu0 %vm224_vm0, %v3244_v2 }
  0x9b   : > { %2765 = vmatprep.subr.bf16.mxu0 %v2764_v38 }
  0x9d   : > { %2627 = vmatmul.mubr.msk.f32.vlgmr.msra.gmra.mrb[18].mxu0 %vm224_vm0, %v3252_v9 }
  0x9e   : > { %2767 = vmatpush3.bf16.msra.mxu0 %v2764_v38  ;;  %2640 = vmatprep.mubr.msk.f32.mxu0 %vm224_vm0, %v3244_v2 }
  0x9f   : > { %2775 = vmatprep.subr.bf16.mxu0 %v2774_v41 }
  0xa1   : > { %2641 = vmatmul.mubr.msk.f32.vlgmr.msra.gmra.mrb[20].mxu0 %vm224_vm0, %v3252_v9 }
  0xa2   : > { %2777 = vmatpush3.bf16.msra.mxu0 %v2774_v41  ;;  %2654 = vmatprep.mubr.msk.f32.mxu0 %vm224_vm0, %v3244_v2 }
  0xa5   : > { %2655 = vmatmul.mubr.msk.f32.vlgmr.msra.gmra.mrb[22].mxu0 %vm224_vm0, %v3252_v9 }
 0x14c   : > { %v2502_v42 = vpop.f32.mrb[0].mxu0 }
 0x14d   : > { %v297_v43 = vpop.f32.mrb[1].mxu0 }
 0x14e   : > { %2507 = vmatprep.mubr.msk.f32.mxu1 %vm306_vm4, %v297_v43 }
 0x14f   : > { %2508 = vmatmul.mubr.msk.f32.vlgmr.msra.gmra.mrb[0].mxu1 %vm306_vm4, %v2502_v42 }
 0x150   : > { %v2516_v44 = vpop.f32.mrb[2].mxu0  ;;  %2683 = vmatpush3.bf16.msk.msra.mxu1 %vm3264_vm3, %v3262_v18 }
 0x151   : > { %v463_v45 = vpop.f32.mrb[3].mxu0  ;;  %2690 = vmatprep.subr.msk.bf16.mxu1 %vm3264_vm3, %v3262_v18 }
 0x152   : > { %2521 = vmatprep.mubr.msk.f32.mxu1 %vm306_vm4, %v463_v45 }
 0x153   : > { %2522 = vmatmul.mubr.msk.f32.vlgmr.msra.gmra.mrb[2].mxu1 %vm306_vm4, %v2516_v44 }
 0x154   : > { %v2530_v46 = vpop.f32.mrb[4].mxu0  ;;  %2693 = vmatpush3.bf16.msk.msra.mxu1 %vm3264_vm3, %v3262_v18 }
 0x155   : > { %v625_v47 = vpop.f32.mrb[5].mxu0  ;;  %2700 = vmatprep.subr.msk.bf16.mxu1 %vm3264_vm3, %v3262_v18 }
 0x156   : > { %2535 = vmatprep.mubr.msk.f32.mxu1 %vm306_vm4, %v625_v47 }
 0x157   : > { %2536 = vmatmul.mubr.msk.f32.vlgmr.msra.gmra.mrb[4].mxu1 %vm306_vm4, %v2530_v46 }
 0x158   : > { %v2544_v48 = vpop.f32.mrb[6].mxu0  ;;  %2703 = vmatpush3.bf16.msk.msra.mxu1 %vm3264_vm3, %v3262_v18 }
 0x159   : > { %v787_v49 = vpop.f32.mrb[7].mxu0  ;;  %2710 = vmatprep.subr.msk.bf16.mxu1 %vm3264_vm3, %v3262_v18 }
 0x15a   : > { %2549 = vmatprep.mubr.msk.f32.mxu1 %vm306_vm4, %v787_v49 }
 0x15b   : > { %2550 = vmatmul.mubr.msk.f32.vlgmr.msra.gmra.mrb[6].mxu1 %vm306_vm4, %v2544_v48 }
 0x15c   : > { %v2558_v50 = vpop.f32.mrb[8].mxu0  ;;  %2713 = vmatpush3.bf16.msk.msra.mxu1 %vm3264_vm3, %v3262_v18 }
 0x15d   : > { %v949_v51 = vpop.f32.mrb[9].mxu0  ;;  %2720 = vmatprep.subr.msk.bf16.mxu1 %vm3264_vm3, %v3262_v18 }
 0x15e   : > { %2563 = vmatprep.mubr.msk.f32.mxu1 %vm306_vm4, %v949_v51 }
 0x15f   : > { %2564 = vmatmul.mubr.msk.f32.vlgmr.msra.gmra.mrb[8].mxu1 %vm306_vm4, %v2558_v50 }
 0x160   : > { %v2572_v52 = vpop.f32.mrb[10].mxu0  ;;  %2723 = vmatpush3.bf16.msk.msra.mxu1 %vm3264_vm3, %v3262_v18 }
 0x161   : > { %v1111_v53 = vpop.f32.mrb[11].mxu0  ;;  %2730 = vmatprep.subr.msk.bf16.mxu1 %vm3264_vm3, %v3262_v18 }
 0x162   : > { %2577 = vmatprep.mubr.msk.f32.mxu1 %vm306_vm4, %v1111_v53 }
 0x163   : > { %2578 = vmatmul.mubr.msk.f32.vlgmr.msra.gmra.mrb[10].mxu1 %vm306_vm4, %v2572_v52 }
 0x164   : > { %v2586_v54 = vpop.f32.mrb[12].mxu0  ;;  %2733 = vmatpush3.bf16.msk.msra.mxu1 %vm3264_vm3, %v3262_v18 }
 0x165   : > { %v1273_v55 = vpop.f32.mrb[13].mxu0  ;;  %2740 = vmatprep.subr.msk.bf16.mxu1 %vm3264_vm3, %v3262_v18 }
 0x166   : > { %2591 = vmatprep.mubr.msk.f32.mxu1 %vm306_vm4, %v1273_v55 }
 0x167   : > { %2592 = vmatmul.mubr.msk.f32.vlgmr.msra.gmra.mrb[12].mxu1 %vm306_vm4, %v2586_v54 }
 0x168   : > { %v2600_v56 = vpop.f32.mrb[14].mxu0  ;;  %2743 = vmatpush3.bf16.msk.msra.mxu1 %vm3264_vm3, %v3262_v18 }
 0x169   : > { %v1435_v57 = vpop.f32.mrb[15].mxu0  ;;  %2750 = vmatprep.subr.msk.bf16.mxu1 %vm3264_vm3, %v3262_v18 }
 0x16a   : > { %2605 = vmatprep.mubr.msk.f32.mxu1 %vm306_vm4, %v1435_v57 }
 0x16b   : > { %2606 = vmatmul.mubr.msk.f32.vlgmr.msra.gmra.mrb[14].mxu1 %vm306_vm4, %v2600_v56 }
 0x16c   : > { %v2614_v58 = vpop.f32.mrb[16].mxu0  ;;  %2753 = vmatpush3.bf16.msk.msra.mxu1 %vm3264_vm3, %v3262_v18 }
 0x16d   : > { %v1597_v59 = vpop.f32.mrb[17].mxu0  ;;  %2760 = vmatprep.subr.msk.bf16.mxu1 %vm3264_vm3, %v3262_v18 }
 0x16e   : > { %2619 = vmatprep.mubr.msk.f32.mxu1 %vm306_vm4, %v1597_v59 }
 0x16f   : > { %2620 = vmatmul.mubr.msk.f32.vlgmr.msra.gmra.mrb[16].mxu1 %vm306_vm4, %v2614_v58 }
 0x170   : > { %v2628_v60 = vpop.f32.mrb[18].mxu0  ;;  %2763 = vmatpush3.bf16.msk.msra.mxu1 %vm3264_vm3, %v3262_v18 }
 0x171   : > { %v1759_v61 = vpop.f32.mrb[19].mxu0  ;;  %2770 = vmatprep.subr.msk.bf16.mxu1 %vm3264_vm3, %v3262_v18 }
 0x172   : > { %2633 = vmatprep.mubr.msk.f32.mxu1 %vm306_vm4, %v1759_v61 }
 0x173   : > { %2634 = vmatmul.mubr.msk.f32.vlgmr.msra.gmra.mrb[18].mxu1 %vm306_vm4, %v2628_v60 }
 0x174   : > { %v2642_v62 = vpop.f32.mrb[20].mxu0  ;;  %2773 = vmatpush3.bf16.msk.msra.mxu1 %vm3264_vm3, %v3262_v18 }
 0x175   : > { %v1921_v63 = vpop.f32.mrb[21].mxu0  ;;  %2780 = vmatprep.subr.msk.bf16.mxu1 %vm3264_vm3, %v3262_v18 }
 0x176   : > { %2647 = vmatprep.mubr.msk.f32.mxu1 %vm306_vm4, %v1921_v63 }
 0x177   : > { %2648 = vmatmul.mubr.msk.f32.vlgmr.msra.gmra.mrb[20].mxu1 %vm306_vm4, %v2642_v62 }
 0x178   : > { %v2656_v0 = vpop.f32.mrb[22].mxu0  ;;  %2783 = vmatpush3.bf16.msk.msra.mxu1 %vm3264_vm3, %v3262_v18 }
 0x179   : > { %v2083_v1 = vpop.f32.mrb[23].mxu0 }
 0x17a   : > { %2661 = vmatprep.mubr.msk.f32.mxu1 %vm306_vm4, %v2083_v1 }
 0x17b   : > { %2662 = vmatmul.mubr.msk.f32.vlgmr.msra.gmra.mrb[22].mxu1 %vm306_vm4, %v2656_v0 }
 0x222   : > { %v2509_v2 = vpop.f32.mrb[0].mxu1 }
 0x223   : > { %393 = vst [vmem:[%s3421_s22 + $0x8] sm:$0x3] %v2509_v2  ;;  %v383_v3 = vpop.f32.mrb[1].mxu1 }
 0x224   : > { %392 = vst [vmem:[%s3421_s22] sm:$0xff] %v383_v3 }
 0x226   : > { %v2523_v4 = vpop.f32.mrb[2].mxu1 }
 0x227   : > { %2304 = vst [vmem:[%s3421_s22 + $0x12] sm:$0x3] %v2523_v4  ;;  %v544_v5 = vpop.f32.mrb[3].mxu1 }
 0x228   : > { %2303 = vst [vmem:[%s3421_s22 + $0xa] sm:$0xff] %v544_v5 }
 0x22a   : > { %v2537_v6 = vpop.f32.mrb[4].mxu1 }
 0x22b   : > { %2313 = vst [vmem:[%s3421_s22 + $0x1c] sm:$0x3] %v2537_v6  ;;  %v706_v7 = vpop.f32.mrb[5].mxu1 }
 0x22c   : > { %2312 = vst [vmem:[%s3421_s22 + $0x14] sm:$0xff] %v706_v7 }
 0x22e   : > { %v2551_v8 = vpop.f32.mrb[6].mxu1 }
 0x22f   : > { %2322 = vst [vmem:[%s3421_s22 + $0x26] sm:$0x3] %v2551_v8  ;;  %v868_v9 = vpop.f32.mrb[7].mxu1 }
 0x230   : > { %2321 = vst [vmem:[%s3421_s22 + $0x1e] sm:$0xff] %v868_v9 }
 0x232   : > { %v2565_v10 = vpop.f32.mrb[8].mxu1 }
 0x233   : > { %2331 = vst [vmem:[%s3421_s22 + $0x30] sm:$0x3] %v2565_v10  ;;  %v1030_v11 = vpop.f32.mrb[9].mxu1 }
 0x234   : > { %2330 = vst [vmem:[%s3421_s22 + $0x28] sm:$0xff] %v1030_v11 }
 0x236   : > { %v2579_v12 = vpop.f32.mrb[10].mxu1 }
 0x237   : > { %2340 = vst [vmem:[%s3421_s22 + $0x3a] sm:$0x3] %v2579_v12  ;;  %v1192_v13 = vpop.f32.mrb[11].mxu1 }
 0x238   : > { %2339 = vst [vmem:[%s3421_s22 + $0x32] sm:$0xff] %v1192_v13 }
 0x23a   : > { %v2593_v14 = vpop.f32.mrb[12].mxu1 }
 0x23b   : > { %2349 = vst [vmem:[%s3421_s22 + $0x44] sm:$0x3] %v2593_v14  ;;  %v1354_v15 = vpop.f32.mrb[13].mxu1 }
 0x23c   : > { %2348 = vst [vmem:[%s3421_s22 + $0x3c] sm:$0xff] %v1354_v15 }
 0x23e   : > { %v2607_v16 = vpop.f32.mrb[14].mxu1 }
 0x23f   : > { %2358 = vst [vmem:[%s3421_s22 + $0x4e] sm:$0x3] %v2607_v16  ;;  %v1516_v17 = vpop.f32.mrb[15].mxu1 }
 0x240   : > { %2357 = vst [vmem:[%s3421_s22 + $0x46] sm:$0xff] %v1516_v17 }
 0x242   : > { %v2621_v18 = vpop.f32.mrb[16].mxu1 }
 0x243   : > { %2367 = vst [vmem:[%s3421_s22 + $0x58] sm:$0x3] %v2621_v18  ;;  %v1678_v19 = vpop.f32.mrb[17].mxu1 }
 0x244   : > { %2366 = vst [vmem:[%s3421_s22 + $0x50] sm:$0xff] %v1678_v19 }
 0x246   : > { %v2635_v20 = vpop.f32.mrb[18].mxu1 }
 0x247   : > { %2376 = vst [vmem:[%s3421_s22 + $0x62] sm:$0x3] %v2635_v20  ;;  %v1840_v21 = vpop.f32.mrb[19].mxu1 }
 0x248   : > { %2375 = vst [vmem:[%s3421_s22 + $0x5a] sm:$0xff] %v1840_v21 }
 0x24a   : > { %v2649_v22 = vpop.f32.mrb[20].mxu1 }
 0x24b   : > { %2385 = vst [vmem:[%s3421_s22 + $0x6c] sm:$0x3] %v2649_v22  ;;  %v2002_v23 = vpop.f32.mrb[21].mxu1 }
 0x24c   : > { %2384 = vst [vmem:[%s3421_s22 + $0x64] sm:$0xff] %v2002_v23 }
 0x24e   : > { %v2663_v24 = vpop.f32.mrb[22].mxu1 }
 0x24f   : > { %2394 = vst [vmem:[%s3421_s22 + $0x76] sm:$0x3] %v2663_v24  ;;  %v2164_v25 = vpop.f32.mrb[23].mxu1 }
 0x250   : > { %2393 = vst [vmem:[%s3421_s22 + $0x6e] sm:$0xff] %v2164_v25 }
 0x251   : > { %2958 = shalt.err (!%p2955_p12)
}
 0x252   : > { %s2959_s10 = scalar_lea.hbm %s3450_s6, 1920  ;;  %s2963_s26 = scalar_lea.hbm %s3501_s3, 3840 }
 0x253   : > { %p2960_p3 = scmp.ne.s32.totalorder %s3450_s6, %s2959_s10  ;;  %p2964_p7 = scmp.lt.u32.totalorder %s3450_s6, %s3501_s3 }
 0x254   : > { %p2965_p9 = scmp.lt.u32.totalorder %s2963_s26, %s2959_s10  ;;  %p2967_p10 = scmp.lt.u32.totalorder %s2959_s10, %s3450_s6 }
 0x255   : > { %p2961_p6 = pnand %p2960_p3, %p3525_p1 }
 0x256   : > { %p2966_p8 = por %p2965_p9, %p2964_p7 }
 0x257   : > { %p2962_p13 = pneg %p2961_p6 }
 0x258   : > { %p2968_p4 = por %p2967_p10, %p2966_p8 }
 0x25a   : > { %p2969_p0 = pnand %p2968_p4, %p2962_p13 }
 0x25c   : > { %2972 = shalt.err (!%p2969_p0)
}
 0x25d   : > { %s3028_s23 = smov 128   ;;  %s3029_s22 = smov 8  }
 0x25e   : > { %2797 = dma.vmem_to_hbm [thread:$0]  (%p3525_p1), %s3452_s4, 1920, %s3450_s6, %s2177_s16, %s3028_s23, %s3028_s23, %s3029_s22  }
 0x25f PF: > { %s2205_s11 = sand.u32 1, %s3007_s12   ;;  %p3526_p2 = scmp.ne.s32.totalorder %s3510_s25, 0 }
 0x260   : > { %p3527_p5 = scmp.ge.s32.totalorder %s3019_s15, 2  ;;  %s2206_s17 = scalar_lea.sflag [#allocation4], %s2205_s11 }
 0x262   : > { %p2811_p11 = pnand %p3527_p5, %p3526_p2 }
 0x264   : > { %3002 = dma.done.wait (!%p2811_p11), %s2206_s17, 1920  }
 0x265   : > { %3004 = vsyncadd (!%p2811_p11), %s2206_s17, 4294965376  ;;  %p15_p12 = scmp.ge.s32.totalorder %s3075_s18, 4   ;;  %s3528_s12 = smov %s3011_s13 }
 0x266   : > { %s3529_s13 = smov %s3015_s14  ;;  %s3530_s14 = smov %s3087_s21 }
 0x267   : > { %s3531_s15 = smov %s3075_s18  ;;  %17 = sbr.rel (!%p15_p12) target bundleno = 5 (0x5), region = 106 }
 0x26e   :  { %2211 = vsyncpa [#allocation3], 1 }
 0x26f   :  { %2213 = vsyncpa [#allocation3 + $0x1], 1 }
 0x270   :  { %2214 = vsyncpa [#allocation6], 1 }
 0x271   :  { %2215 = vsyncpa [#allocation4], 1 }
 0x272   :  { %2217 = vsyncpa [#allocation4 + $0x1], 1 }

</bundles_post_ra>
